<compile_context>
chip_gen: v5e
topology: v5e:2x2
jax: 0.10.0
libtpu: 0.0.40
codegen_flags: <defaults>
</compile_context>

<pallas_src>
import functools

import jax
import jax.numpy as jnp
from jax.experimental import pallas as pl
from jax.experimental.pallas import tpu as pltpu


def _round_up(x, m):
    return (x + m - 1) // m * m


def _convo_kernel(x_ref, w_ref, prm_ref, o_ref, patch_ref, *,
                  tb, cin, cout, ksz_h, ksz_w, ih, iw):
    """One grid step = one batch tile of `tb` images.

    x_ref:     (1, 4*cin, L) bf16   2x2 parity split of the padded input;
                                    row (p*2+q)*cin + c holds x_pad[c, 2i+p, 2j+q]
                                    flattened on lanes as b*ih*iw + i*iw + j,
                                    tail-padded to L (multiple of 128).
    w_ref:     (cout, K) bf16       conv weight, k ordered (kh, kw, cin).
    prm_ref:   (cout, 3) f32        [:,0]=conv bias, [:,1]=BN scale, [:,2]=BN shift.
    o_ref:     (1, tb*cout, ih*iw)  pooled output (last row/col of each (ih,iw)
                                    grid is boundary garbage; wrapper strips it).
    patch_ref: (K, 4*cext) bf16     VMEM scratch holding the im2col slab.
    """
    cext = tb * ih * iw

    # ---- in-kernel im2col: 4*KH*KW static contiguous block copies. ---------
    # For pool candidate (dh, dw) and tap (kh, kw) the needed input pixel is
    # x_pad[2*i + dh + kh, 2*j + dw + kw]; after the 2x2 parity split that is
    # parity grid ((dh+kh)%2, (dw+kw)%2) shifted by the CONSTANT flat-lane
    # offset ((dh+kh)//2)*iw + ((dw+kw)//2) -> every copy is a static slice.
    for dh in range(2):
        for dw in range(2):
            qidx = dh * 2 + dw
            for kh in range(ksz_h):
                for kw in range(ksz_w):
                    par = ((dh + kh) % 2) * 2 + ((dw + kw) % 2)
                    lsh = ((dh + kh) // 2) * iw + ((dw + kw) // 2)
                    krow = (kh * ksz_w + kw) * cin
                    patch_ref[krow:krow + cin,
                              qidx * cext:(qidx + 1) * cext] = \
                        x_ref[0, par * cin:(par + 1) * cin, lsh:lsh + cext]

    # ---- Conv2d('same'): ONE bf16 MXU matmul, f32 accumulation. ------------
    y = jnp.dot(w_ref[...], patch_ref[...],
                preferred_element_type=jnp.float32)          # (cout, 4*cext)

    # ---- bias + ReLU + inference BatchNorm (per-channel broadcasts). -------
    bias = prm_ref[:, 0:1]
    scale = prm_ref[:, 1:2]
    shift = prm_ref[:, 2:3]
    y = jnp.maximum(y + bias, 0.0) * scale + shift

    # ---- MaxPool2d((2,2)): max over the 4 pool-candidate lane chunks. ------
    y = jnp.maximum(jnp.maximum(y[:, 0 * cext:1 * cext], y[:, 1 * cext:2 * cext]),
                    jnp.maximum(y[:, 2 * cext:3 * cext], y[:, 3 * cext:4 * cext]))

    # ---- Dropout2d(0.4): identity in eval mode (see TODO at top). ----------

    # ---- per-image stores -> NCHW output needs only a free reshape. --------
    ihw = ih * iw
    for b in range(tb):
        o_ref[0, b * cout:(b + 1) * cout] = \
            y[:, b * ihw:(b + 1) * ihw].astype(o_ref.dtype)


def _pick_batch_tile(n, footprint_bytes, budget_bytes):
    """Largest divisor of n whose per-step VMEM footprint fits the budget,
    preferring grid >= 2 (so both v7x TensorCores run and the BlockSpec
    double-buffering has something to overlap).  For large N this also yields
    wide (>=512-lane) blocks that amortize the ~0.35us per-step overhead."""
    divisors = [d for d in range(n, 0, -1) if n % d == 0]
    want_grid = 2 if n >= 2 else 1
    for tb in divisors:
        if n // tb >= want_grid and footprint_bytes(tb) <= budget_bytes:
            return tb
    for tb in divisors:
        if footprint_bytes(tb) <= budget_bytes:
            return tb
    return 1


def convo_forward(x_nchw, w_oihw, bias, gamma, beta, run_mean, run_var,
                  eps=1e-5, batch_tile=None, out_dtype=jnp.float32,
                  vmem_budget_bytes=24 * 2**20):
    """Full ConvoModule forward (eval mode).  Input/output are NCHW.

    vmem_budget_bytes defaults to 24 MiB (safe on v7x's 64 MiB VMEM); on
    v5e/v6e (128 MiB) it can be raised for bigger batch tiles.  Pass
    out_dtype=jnp.bfloat16 to halve output writeback bytes."""
    N, Cin, H, W = x_nchw.shape
    Cout, Cin_w, KH, KW = w_oihw.shape
    assert Cin == Cin_w
    assert KH % 2 == 1 and KW % 2 == 1, "padding='same' fast path needs odd kernels"
    assert H % 2 == 0 and W % 2 == 0, "MaxPool2d(2,2) path assumes even H, W"
    Ho, Wo = H // 2, W // 2
    eh, ew = (KH - 1) // 2, (KW - 1) // 2
    Ih, Iw = Ho + eh, Wo + ew          # parity-grid extent (incl. boundary garbage)
    K = KH * KW * Cin
    out_isz = jnp.dtype(out_dtype).itemsize

    def footprint(tb):
        cext = tb * Ih * Iw
        L = _round_up(cext + eh * Iw + ew, 128)
        in_b = 2 * (4 * Cin * L * 2)                    # double-buffered bf16 input
        w_b = 2 * (Cout * K * 2 + Cout * 3 * 4)         # weights + packed params
        out_b = 2 * (tb * Cout * Ih * Iw * out_isz)     # double-buffered output
        slab = K * 4 * cext * 2                         # bf16 im2col scratch
        inter = Cout * 4 * cext * 4 + Cout * cext * 4   # f32 pre-pool + pooled
        return int(1.3 * (in_b + w_b + out_b + slab + inter))

    tb = batch_tile if batch_tile is not None else \
        _pick_batch_tile(N, footprint, vmem_budget_bytes)
    assert N % tb == 0
    G = N // tb
    Cext = tb * Ih * Iw
    L = _round_up(Cext + eh * Iw + ew, 128)             # covers the max lane shift

    # ---------- glue (plain XLA, raw-input-sized, ALL in bf16) --------------
    xb = x_nchw.astype(jnp.bfloat16)                              # (N,Cin,H,W)
    xp = jnp.pad(xb, ((0, 0), (0, 0), (eh, eh), (ew, ew)))        # (N,Cin,Hp,Wp)
    xq = xp.reshape(G, tb, Cin, Ih, 2, Iw, 2)
    xq = jnp.transpose(xq, (0, 4, 6, 2, 1, 3, 5))                 # (G,p,q,Cin,tb,Ih,Iw)
    xq = xq.reshape(G, 4 * Cin, Cext)
    xsrc = jnp.pad(xq, ((0, 0), (0, 0), (0, L - Cext)))           # (G, 4*Cin, L)

    # Weight (O,I,KH,KW) -> (Cout, K) with k = (kh, kw, cin); bf16 for the MXU.
    w_t = jnp.transpose(w_oihw, (0, 2, 3, 1)).reshape(Cout, K).astype(jnp.bfloat16)

    # Inference BN folded to per-channel scale/shift; packed with the conv bias
    # into one (Cout, 3) resident block (one DMA instead of three).
    scale = (gamma / jnp.sqrt(run_var + eps)).astype(jnp.float32)
    shift = (beta - run_mean * scale).astype(jnp.float32)
    params = jnp.stack([bias.astype(jnp.float32), scale, shift], axis=1)

    est = footprint(tb)
    vmem_limit = None
    if est > 28 * 2**20:       # above the 32 MiB default scoped limit (w/ margin)
        vmem_limit = int(min(100 * 2**20, est + 8 * 2**20))

    kernel = functools.partial(_convo_kernel, tb=tb, cin=Cin, cout=Cout,
                               ksz_h=KH, ksz_w=KW, ih=Ih, iw=Iw)

    out = pl.pallas_call(
        kernel,
        out_shape=jax.ShapeDtypeStruct((G, tb * Cout, Ih * Iw), out_dtype),
        grid=(G,),
        in_specs=[
            pl.BlockSpec((1, 4 * Cin, L), lambda g: (g, 0, 0)),
            pl.BlockSpec((Cout, K), lambda g: (0, 0)),        # resident
            pl.BlockSpec((Cout, 3), lambda g: (0, 0)),        # resident
        ],
        out_specs=pl.BlockSpec((1, tb * Cout, Ih * Iw), lambda g: (g, 0, 0)),
        scratch_shapes=[pltpu.VMEM((K, 4 * Cext), jnp.bfloat16)],
        compiler_params=pltpu.CompilerParams(
            dimension_semantics=("parallel",),
            vmem_limit_bytes=vmem_limit),
    )(xsrc, w_t, params)

    # (G, tb*Cout, Ih*Iw) -> (N, Cout, Ih, Iw) is a free reshape; the slice
    # drops the boundary-garbage row/col.  No XLA transpose of the output.
    out = out.reshape(N, Cout, Ih, Iw)[:, :, :Ho, :Wo]
    return out


def _reference(x, w, b, gamma, beta, rm, rv, eps=1e-5):
    """Pure-JAX f32 reference of the same (eval-mode) forward pass, NCHW."""
    y = jax.lax.conv_general_dilated(
        x, w, window_strides=(1, 1), padding="SAME",
        dimension_numbers=("NCHW", "OIHW", "NCHW"),
        precision=jax.lax.Precision.HIGHEST)
    y = y + b.reshape(1, -1, 1, 1)
    y = jnp.maximum(y, 0.0)
    scale = gamma / jnp.sqrt(rv + eps)
    shift = beta - rm * scale
    y = y * scale.reshape(1, -1, 1, 1) + shift.reshape(1, -1, 1, 1)
    y = jax.lax.reduce_window(y, -jnp.inf, jax.lax.max,
                              (1, 1, 2, 2), (1, 1, 2, 2), "VALID")
    return y


if __name__ == "__main__":
    # Shapes consistent with ConvoModule(input_channels=4, out_channels=8, kernel_size=3)
    N, Cin, H, W = 2, 4, 16, 16
    Cout, Kk = 8, 3

    key = jax.random.PRNGKey(0)
    ks = jax.random.split(key, 7)
    x = jax.random.normal(ks[0], (N, Cin, H, W), jnp.float32)
    conv_w = jax.random.uniform(ks[1], (Cout, Cin, Kk, Kk), jnp.float32, -0.3, 0.3)
    conv_b = jax.random.uniform(ks[2], (Cout,), jnp.float32, -0.1, 0.1)
    bn_gamma = 1.0 + 0.1 * jax.random.normal(ks[3], (Cout,), jnp.float32)
    bn_beta = 0.1 * jax.random.normal(ks[4], (Cout,), jnp.float32)
    bn_mean = 0.1 * jax.random.normal(ks[5], (Cout,), jnp.float32)
    bn_var = 0.5 + jax.random.uniform(ks[6], (Cout,), jnp.float32)

    out = convo_forward(x, conv_w, conv_b, bn_gamma, bn_beta, bn_mean, bn_var)
    out = jax.block_until_ready(out)

    ref = _reference(x, conv_w, conv_b, bn_gamma, bn_beta, bn_mean, bn_var)
    assert out.shape == (N, Cout, H // 2, W // 2), out.shape
    max_err = float(jnp.max(jnp.abs(out - ref)))
    # bf16 inputs / f32 accumulation vs f32 reference: ~1e-2 abs error expected.
    assert jnp.allclose(out, ref, atol=2e-2, rtol=2e-2), max_err

    print("KERNEL_OK")
</pallas_src>

<mosaic_0001>
module attributes {stable_mosaic.version = 11 : i64} {
  func.func @_convo_kernel(%arg0: i32, %arg1: memref<1x16x128xbf16, #tpu.memory_space<vmem>>, %arg2: memref<8x36xbf16, #tpu.memory_space<vmem>>, %arg3: memref<8x3xf32, #tpu.memory_space<vmem>>, %arg4: memref<1x8x81xf32, #tpu.memory_space<vmem>>, %arg5: memref<36x324xbf16, #tpu.memory_space<vmem>>) attributes {dimension_semantics = [#tpu.dimension_semantics<parallel>], iteration_bounds = array<i64: 2>, scalar_prefetch = 0 : i64, scratch_operands = 1 : i64, tpu.core_type = #tpu.core_type<tc>, window_params = [{transform_indices = @transform_0, window_bounds = array<i64: 1, 16, 128>}, {pipeline_mode = #tpu.pipeline_mode<synchronous>, transform_indices = @transform_1, window_bounds = array<i64: 8, 36>}, {pipeline_mode = #tpu.pipeline_mode<synchronous>, transform_indices = @transform_2, window_bounds = array<i64: 8, 3>}, {transform_indices = @transform_3, window_bounds = array<i64: 1, 8, 81>}]} {
    %c0 = arith.constant 0 : index
    %c0_0 = arith.constant 0 : index
    %c0_1 = arith.constant 0 : index
    %0 = vector.load %arg1[%c0, %c0_0, %c0_1] : memref<1x16x128xbf16, #tpu.memory_space<vmem>>, vector<1x4x81xbf16>
    %1 = vector.shape_cast %0 : vector<1x4x81xbf16> to vector<4x81xbf16>
    %c0_2 = arith.constant 0 : index
    %c0_3 = arith.constant 0 : index
    %2 = vector.load %arg5[%c0_2, %c0_3] : memref<36x324xbf16, #tpu.memory_space<vmem>>, vector<4x81xbf16>
    tpu.vector_store %arg5[%c0_2, %c0_3], %1 {strides = array<i32>} : memref<36x324xbf16, #tpu.memory_space<vmem>>, vector<4x81xbf16>,
    %c0_4 = arith.constant 0 : index
    %c4 = arith.constant 4 : index
    %c0_5 = arith.constant 0 : index
    %3 = vector.load %arg1[%c0_4, %c4, %c0_5] : memref<1x16x128xbf16, #tpu.memory_space<vmem>>, vector<1x4x81xbf16>
    %4 = vector.shape_cast %3 : vector<1x4x81xbf16> to vector<4x81xbf16>
    %c4_6 = arith.constant 4 : index
    %c0_7 = arith.constant 0 : index
    %5 = vector.load %arg5[%c4_6, %c0_7] : memref<36x324xbf16, #tpu.memory_space<vmem>>, vector<4x81xbf16>
    tpu.vector_store %arg5[%c4_6, %c0_7], %4 {strides = array<i32>} : memref<36x324xbf16, #tpu.memory_space<vmem>>, vector<4x81xbf16>,
    %c0_8 = arith.constant 0 : index
    %c0_9 = arith.constant 0 : index
    %c1 = arith.constant 1 : index
    %6 = vector.load %arg1[%c0_8, %c0_9, %c1] : memref<1x16x128xbf16, #tpu.memory_space<vmem>>, vector<1x4x81xbf16>
    %7 = vector.shape_cast %6 : vector<1x4x81xbf16> to vector<4x81xbf16>
    %c8 = arith.constant 8 : index
    %c0_10 = arith.constant 0 : index
    %8 = vector.load %arg5[%c8, %c0_10] : memref<36x324xbf16, #tpu.memory_space<vmem>>, vector<4x81xbf16>
    tpu.vector_store %arg5[%c8, %c0_10], %7 {strides = array<i32>} : memref<36x324xbf16, #tpu.memory_space<vmem>>, vector<4x81xbf16>,
    %c0_11 = arith.constant 0 : index
    %c8_12 = arith.constant 8 : index
    %c0_13 = arith.constant 0 : index
    %9 = vector.load %arg1[%c0_11, %c8_12, %c0_13] : memref<1x16x128xbf16, #tpu.memory_space<vmem>>, vector<1x4x81xbf16>
    %10 = vector.shape_cast %9 : vector<1x4x81xbf16> to vector<4x81xbf16>
    %c12 = arith.constant 12 : index
    %c0_14 = arith.constant 0 : index
    %11 = vector.load %arg5[%c12, %c0_14] : memref<36x324xbf16, #tpu.memory_space<vmem>>, vector<4x81xbf16>
    tpu.vector_store %arg5[%c12, %c0_14], %10 {strides = array<i32>} : memref<36x324xbf16, #tpu.memory_space<vmem>>, vector<4x81xbf16>,
    %c0_15 = arith.constant 0 : index
    %c12_16 = arith.constant 12 : index
    %c0_17 = arith.constant 0 : index
    %12 = vector.load %arg1[%c0_15, %c12_16, %c0_17] : memref<1x16x128xbf16, #tpu.memory_space<vmem>>, vector<1x4x81xbf16>
    %13 = vector.shape_cast %12 : vector<1x4x81xbf16> to vector<4x81xbf16>
    %c16 = arith.constant 16 : index
    %c0_18 = arith.constant 0 : index
    %14 = vector.load %arg5[%c16, %c0_18] : memref<36x324xbf16, #tpu.memory_space<vmem>>, vector<4x81xbf16>
    tpu.vector_store %arg5[%c16, %c0_18], %13 {strides = array<i32>} : memref<36x324xbf16, #tpu.memory_space<vmem>>, vector<4x81xbf16>,
    %c0_19 = arith.constant 0 : index
    %c8_20 = arith.constant 8 : index
    %c1_21 = arith.constant 1 : index
    %15 = vector.load %arg1[%c0_19, %c8_20, %c1_21] : memref<1x16x128xbf16, #tpu.memory_space<vmem>>, vector<1x4x81xbf16>
    %16 = vector.shape_cast %15 : vector<1x4x81xbf16> to vector<4x81xbf16>
    %c20 = arith.constant 20 : index
    %c0_22 = arith.constant 0 : index
    %17 = vector.load %arg5[%c20, %c0_22] : memref<36x324xbf16, #tpu.memory_space<vmem>>, vector<4x81xbf16>
    tpu.vector_store %arg5[%c20, %c0_22], %16 {strides = array<i32>} : memref<36x324xbf16, #tpu.memory_space<vmem>>, vector<4x81xbf16>,
    %c0_23 = arith.constant 0 : index
    %c0_24 = arith.constant 0 : index
    %c9 = arith.constant 9 : index
    %18 = vector.load %arg1[%c0_23, %c0_24, %c9] : memref<1x16x128xbf16, #tpu.memory_space<vmem>>, vector<1x4x81xbf16>
    %19 = vector.shape_cast %18 : vector<1x4x81xbf16> to vector<4x81xbf16>
    %c24 = arith.constant 24 : index
    %c0_25 = arith.constant 0 : index
    %20 = vector.load %arg5[%c24, %c0_25] : memref<36x324xbf16, #tpu.memory_space<vmem>>, vector<4x81xbf16>
    tpu.vector_store %arg5[%c24, %c0_25], %19 {strides = array<i32>} : memref<36x324xbf16, #tpu.memory_space<vmem>>, vector<4x81xbf16>,
    %c0_26 = arith.constant 0 : index
    %c4_27 = arith.constant 4 : index
    %c9_28 = arith.constant 9 : index
    %21 = vector.load %arg1[%c0_26, %c4_27, %c9_28] : memref<1x16x128xbf16, #tpu.memory_space<vmem>>, vector<1x4x81xbf16>
    %22 = vector.shape_cast %21 : vector<1x4x81xbf16> to vector<4x81xbf16>
    %c28 = arith.constant 28 : index
    %c0_29 = arith.constant 0 : index
    %23 = vector.load %arg5[%c28, %c0_29] : memref<36x324xbf16, #tpu.memory_space<vmem>>, vector<4x81xbf16>
    tpu.vector_store %arg5[%c28, %c0_29], %22 {strides = array<i32>} : memref<36x324xbf16, #tpu.memory_space<vmem>>, vector<4x81xbf16>,
    %c0_30 = arith.constant 0 : index
    %c0_31 = arith.constant 0 : index
    %c10 = arith.constant 10 : index
    %24 = vector.load %arg1[%c0_30, %c0_31, %c10] : memref<1x16x128xbf16, #tpu.memory_space<vmem>>, vector<1x4x81xbf16>
    %25 = vector.shape_cast %24 : vector<1x4x81xbf16> to vector<4x81xbf16>
    %c32 = arith.constant 32 : index
    %c0_32 = arith.constant 0 : index
    %26 = vector.load %arg5[%c32, %c0_32] : memref<36x324xbf16, #tpu.memory_space<vmem>>, vector<4x81xbf16>
    tpu.vector_store %arg5[%c32, %c0_32], %25 {strides = array<i32>} : memref<36x324xbf16, #tpu.memory_space<vmem>>, vector<4x81xbf16>,
    %c0_33 = arith.constant 0 : index
    %c4_34 = arith.constant 4 : index
    %c0_35 = arith.constant 0 : index
    %27 = vector.load %arg1[%c0_33, %c4_34, %c0_35] : memref<1x16x128xbf16, #tpu.memory_space<vmem>>, vector<1x4x81xbf16>
    %28 = vector.shape_cast %27 : vector<1x4x81xbf16> to vector<4x81xbf16>
    %c0_36 = arith.constant 0 : index
    %c81 = arith.constant 81 : index
    %29 = vector.load %arg5[%c0_36, %c81] : memref<36x324xbf16, #tpu.memory_space<vmem>>, vector<4x81xbf16>
    tpu.vector_store %arg5[%c0_36, %c81], %28 {strides = array<i32>} : memref<36x324xbf16, #tpu.memory_space<vmem>>, vector<4x81xbf16>,
    %c0_37 = arith.constant 0 : index
    %c0_38 = arith.constant 0 : index
    %c1_39 = arith.constant 1 : index
    %30 = vector.load %arg1[%c0_37, %c0_38, %c1_39] : memref<1x16x128xbf16, #tpu.memory_space<vmem>>, vector<1x4x81xbf16>
    %31 = vector.shape_cast %30 : vector<1x4x81xbf16> to vector<4x81xbf16>
    %c4_40 = arith.constant 4 : index
    %c81_41 = arith.constant 81 : index
    %32 = vector.load %arg5[%c4_40, %c81_41] : memref<36x324xbf16, #tpu.memory_space<vmem>>, vector<4x81xbf16>
    tpu.vector_store %arg5[%c4_40, %c81_41], %31 {strides = array<i32>} : memref<36x324xbf16, #tpu.memory_space<vmem>>, vector<4x81xbf16>,
    %c0_42 = arith.constant 0 : index
    %c4_43 = arith.constant 4 : index
    %c1_44 = arith.constant 1 : index
    %33 = vector.load %arg1[%c0_42, %c4_43, %c1_44] : memref<1x16x128xbf16, #tpu.memory_space<vmem>>, vector<1x4x81xbf16>
    %34 = vector.shape_cast %33 : vector<1x4x81xbf16> to vector<4x81xbf16>
    %c8_45 = arith.constant 8 : index
    %c81_46 = arith.constant 81 : index
    %35 = vector.load %arg5[%c8_45, %c81_46] : memref<36x324xbf16, #tpu.memory_space<vmem>>, vector<4x81xbf16>
    tpu.vector_store %arg5[%c8_45, %c81_46], %34 {strides = array<i32>} : memref<36x324xbf16, #tpu.memory_space<vmem>>, vector<4x81xbf16>,
    %c0_47 = arith.constant 0 : index
    %c12_48 = arith.constant 12 : index
    %c0_49 = arith.constant 0 : index
    %36 = vector.load %arg1[%c0_47, %c12_48, %c0_49] : memref<1x16x128xbf16, #tpu.memory_space<vmem>>, vector<1x4x81xbf16>
    %37 = vector.shape_cast %36 : vector<1x4x81xbf16> to vector<4x81xbf16>
    %c12_50 = arith.constant 12 : index
    %c81_51 = arith.constant 81 : index
    %38 = vector.load %arg5[%c12_50, %c81_51] : memref<36x324xbf16, #tpu.memory_space<vmem>>, vector<4x81xbf16>
    tpu.vector_store %arg5[%c12_50, %c81_51], %37 {strides = array<i32>} : memref<36x324xbf16, #tpu.memory_space<vmem>>, vector<4x81xbf16>,
    %c0_52 = arith.constant 0 : index
    %c8_53 = arith.constant 8 : index
    %c1_54 = arith.constant 1 : index
    %39 = vector.load %arg1[%c0_52, %c8_53, %c1_54] : memref<1x16x128xbf16, #tpu.memory_space<vmem>>, vector<1x4x81xbf16>
    %40 = vector.shape_cast %39 : vector<1x4x81xbf16> to vector<4x81xbf16>
    %c16_55 = arith.constant 16 : index
    %c81_56 = arith.constant 81 : index
    %41 = vector.load %arg5[%c16_55, %c81_56] : memref<36x324xbf16, #tpu.memory_space<vmem>>, vector<4x81xbf16>
    tpu.vector_store %arg5[%c16_55, %c81_56], %40 {strides = array<i32>} : memref<36x324xbf16, #tpu.memory_space<vmem>>, vector<4x81xbf16>,
    %c0_57 = arith.constant 0 : index
    %c12_58 = arith.constant 12 : index
    %c1_59 = arith.constant 1 : index
    %42 = vector.load %arg1[%c0_57, %c12_58, %c1_59] : memref<1x16x128xbf16, #tpu.memory_space<vmem>>, vector<1x4x81xbf16>
    %43 = vector.shape_cast %42 : vector<1x4x81xbf16> to vector<4x81xbf16>
    %c20_60 = arith.constant 20 : index
    %c81_61 = arith.constant 81 : index
    %44 = vector.load %arg5[%c20_60, %c81_61] : memref<36x324xbf16, #tpu.memory_space<vmem>>, vector<4x81xbf16>
    tpu.vector_store %arg5[%c20_60, %c81_61], %43 {strides = array<i32>} : memref<36x324xbf16, #tpu.memory_space<vmem>>, vector<4x81xbf16>,
    %c0_62 = arith.constant 0 : index
    %c4_63 = arith.constant 4 : index
    %c9_64 = arith.constant 9 : index
    %45 = vector.load %arg1[%c0_62, %c4_63, %c9_64] : memref<1x16x128xbf16, #tpu.memory_space<vmem>>, vector<1x4x81xbf16>
    %46 = vector.shape_cast %45 : vector<1x4x81xbf16> to vector<4x81xbf16>
    %c24_65 = arith.constant 24 : index
    %c81_66 = arith.constant 81 : index
    %47 = vector.load %arg5[%c24_65, %c81_66] : memref<36x324xbf16, #tpu.memory_space<vmem>>, vector<4x81xbf16>
    tpu.vector_store %arg5[%c24_65, %c81_66], %46 {strides = array<i32>} : memref<36x324xbf16, #tpu.memory_space<vmem>>, vector<4x81xbf16>,
    %c0_67 = arith.constant 0 : index
    %c0_68 = arith.constant 0 : index
    %c10_69 = arith.constant 10 : index
    %48 = vector.load %arg1[%c0_67, %c0_68, %c10_69] : memref<1x16x128xbf16, #tpu.memory_space<vmem>>, vector<1x4x81xbf16>
    %49 = vector.shape_cast %48 : vector<1x4x81xbf16> to vector<4x81xbf16>
    %c28_70 = arith.constant 28 : index
    %c81_71 = arith.constant 81 : index
    %50 = vector.load %arg5[%c28_70, %c81_71] : memref<36x324xbf16, #tpu.memory_space<vmem>>, vector<4x81xbf16>
    tpu.vector_store %arg5[%c28_70, %c81_71], %49 {strides = array<i32>} : memref<36x324xbf16, #tpu.memory_space<vmem>>, vector<4x81xbf16>,
    %c0_72 = arith.constant 0 : index
    %c4_73 = arith.constant 4 : index
    %c10_74 = arith.constant 10 : index
    %51 = vector.load %arg1[%c0_72, %c4_73, %c10_74] : memref<1x16x128xbf16, #tpu.memory_space<vmem>>, vector<1x4x81xbf16>
    %52 = vector.shape_cast %51 : vector<1x4x81xbf16> to vector<4x81xbf16>
    %c32_75 = arith.constant 32 : index
    %c81_76 = arith.constant 81 : index
    %53 = vector.load %arg5[%c32_75, %c81_76] : memref<36x324xbf16, #tpu.memory_space<vmem>>, vector<4x81xbf16>
    tpu.vector_store %arg5[%c32_75, %c81_76], %52 {strides = array<i32>} : memref<36x324xbf16, #tpu.memory_space<vmem>>, vector<4x81xbf16>,
    %c0_77 = arith.constant 0 : index
    %c8_78 = arith.constant 8 : index
    %c0_79 = arith.constant 0 : index
    %54 = vector.load %arg1[%c0_77, %c8_78, %c0_79] : memref<1x16x128xbf16, #tpu.memory_space<vmem>>, vector<1x4x81xbf16>
    %55 = vector.shape_cast %54 : vector<1x4x81xbf16> to vector<4x81xbf16>
    %c0_80 = arith.constant 0 : index
    %c162 = arith.constant 162 : index
    %56 = vector.load %arg5[%c0_80, %c162] : memref<36x324xbf16, #tpu.memory_space<vmem>>, vector<4x81xbf16>
    tpu.vector_store %arg5[%c0_80, %c162], %55 {strides = array<i32>} : memref<36x324xbf16, #tpu.memory_space<vmem>>, vector<4x81xbf16>,
    %c0_81 = arith.constant 0 : index
    %c12_82 = arith.constant 12 : index
    %c0_83 = arith.constant 0 : index
    %57 = vector.load %arg1[%c0_81, %c12_82, %c0_83] : memref<1x16x128xbf16, #tpu.memory_space<vmem>>, vector<1x4x81xbf16>
    %58 = vector.shape_cast %57 : vector<1x4x81xbf16> to vector<4x81xbf16>
    %c4_84 = arith.constant 4 : index
    %c162_85 = arith.constant 162 : index
    %59 = vector.load %arg5[%c4_84, %c162_85] : memref<36x324xbf16, #tpu.memory_space<vmem>>, vector<4x81xbf16>
    tpu.vector_store %arg5[%c4_84, %c162_85], %58 {strides = array<i32>} : memref<36x324xbf16, #tpu.memory_space<vmem>>, vector<4x81xbf16>,
    %c0_86 = arith.constant 0 : index
    %c8_87 = arith.constant 8 : index
    %c1_88 = arith.constant 1 : index
    %60 = vector.load %arg1[%c0_86, %c8_87, %c1_88] : memref<1x16x128xbf16, #tpu.memory_space<vmem>>, vector<1x4x81xbf16>
    %61 = vector.shape_cast %60 : vector<1x4x81xbf16> to vector<4x81xbf16>
    %c8_89 = arith.constant 8 : index
    %c162_90 = arith.constant 162 : index
    %62 = vector.load %arg5[%c8_89, %c162_90] : memref<36x324xbf16, #tpu.memory_space<vmem>>, vector<4x81xbf16>
    tpu.vector_store %arg5[%c8_89, %c162_90], %61 {strides = array<i32>} : memref<36x324xbf16, #tpu.memory_space<vmem>>, vector<4x81xbf16>,
    %c0_91 = arith.constant 0 : index
    %c0_92 = arith.constant 0 : index
    %c9_93 = arith.constant 9 : index
    %63 = vector.load %arg1[%c0_91, %c0_92, %c9_93] : memref<1x16x128xbf16, #tpu.memory_space<vmem>>, vector<1x4x81xbf16>
    %64 = vector.shape_cast %63 : vector<1x4x81xbf16> to vector<4x81xbf16>
    %c12_94 = arith.constant 12 : index
    %c162_95 = arith.constant 162 : index
    %65 = vector.load %arg5[%c12_94, %c162_95] : memref<36x324xbf16, #tpu.memory_space<vmem>>, vector<4x81xbf16>
    tpu.vector_store %arg5[%c12_94, %c162_95], %64 {strides = array<i32>} : memref<36x324xbf16, #tpu.memory_space<vmem>>, vector<4x81xbf16>,
    %c0_96 = arith.constant 0 : index
    %c4_97 = arith.constant 4 : index
    %c9_98 = arith.constant 9 : index
    %66 = vector.load %arg1[%c0_96, %c4_97, %c9_98] : memref<1x16x128xbf16, #tpu.memory_space<vmem>>, vector<1x4x81xbf16>
    %67 = vector.shape_cast %66 : vector<1x4x81xbf16> to vector<4x81xbf16>
    %c16_99 = arith.constant 16 : index
    %c162_100 = arith.constant 162 : index
    %68 = vector.load %arg5[%c16_99, %c162_100] : memref<36x324xbf16, #tpu.memory_space<vmem>>, vector<4x81xbf16>
    tpu.vector_store %arg5[%c16_99, %c162_100], %67 {strides = array<i32>} : memref<36x324xbf16, #tpu.memory_space<vmem>>, vector<4x81xbf16>,
    %c0_101 = arith.constant 0 : index
    %c0_102 = arith.constant 0 : index
    %c10_103 = arith.constant 10 : index
    %69 = vector.load %arg1[%c0_101, %c0_102, %c10_103] : memref<1x16x128xbf16, #tpu.memory_space<vmem>>, vector<1x4x81xbf16>
    %70 = vector.shape_cast %69 : vector<1x4x81xbf16> to vector<4x81xbf16>
    %c20_104 = arith.constant 20 : index
    %c162_105 = arith.constant 162 : index
    %71 = vector.load %arg5[%c20_104, %c162_105] : memref<36x324xbf16, #tpu.memory_space<vmem>>, vector<4x81xbf16>
    tpu.vector_store %arg5[%c20_104, %c162_105], %70 {strides = array<i32>} : memref<36x324xbf16, #tpu.memory_space<vmem>>, vector<4x81xbf16>,
    %c0_106 = arith.constant 0 : index
    %c8_107 = arith.constant 8 : index
    %c9_108 = arith.constant 9 : index
    %72 = vector.load %arg1[%c0_106, %c8_107, %c9_108] : memref<1x16x128xbf16, #tpu.memory_space<vmem>>, vector<1x4x81xbf16>
    %73 = vector.shape_cast %72 : vector<1x4x81xbf16> to vector<4x81xbf16>
    %c24_109 = arith.constant 24 : index
    %c162_110 = arith.constant 162 : index
    %74 = vector.load %arg5[%c24_109, %c162_110] : memref<36x324xbf16, #tpu.memory_space<vmem>>, vector<4x81xbf16>
    tpu.vector_store %arg5[%c24_109, %c162_110], %73 {strides = array<i32>} : memref<36x324xbf16, #tpu.memory_space<vmem>>, vector<4x81xbf16>,
    %c0_111 = arith.constant 0 : index
    %c12_112 = arith.constant 12 : index
    %c9_113 = arith.constant 9 : index
    %75 = vector.load %arg1[%c0_111, %c12_112, %c9_113] : memref<1x16x128xbf16, #tpu.memory_space<vmem>>, vector<1x4x81xbf16>
    %76 = vector.shape_cast %75 : vector<1x4x81xbf16> to vector<4x81xbf16>
    %c28_114 = arith.constant 28 : index
    %c162_115 = arith.constant 162 : index
    %77 = vector.load %arg5[%c28_114, %c162_115] : memref<36x324xbf16, #tpu.memory_space<vmem>>, vector<4x81xbf16>
    tpu.vector_store %arg5[%c28_114, %c162_115], %76 {strides = array<i32>} : memref<36x324xbf16, #tpu.memory_space<vmem>>, vector<4x81xbf16>,
    %c0_116 = arith.constant 0 : index
    %c8_117 = arith.constant 8 : index
    %c10_118 = arith.constant 10 : index
    %78 = vector.load %arg1[%c0_116, %c8_117, %c10_118] : memref<1x16x128xbf16, #tpu.memory_space<vmem>>, vector<1x4x81xbf16>
    %79 = vector.shape_cast %78 : vector<1x4x81xbf16> to vector<4x81xbf16>
    %c32_119 = arith.constant 32 : index
    %c162_120 = arith.constant 162 : index
    %80 = vector.load %arg5[%c32_119, %c162_120] : memref<36x324xbf16, #tpu.memory_space<vmem>>, vector<4x81xbf16>
    tpu.vector_store %arg5[%c32_119, %c162_120], %79 {strides = array<i32>} : memref<36x324xbf16, #tpu.memory_space<vmem>>, vector<4x81xbf16>,
    %c0_121 = arith.constant 0 : index
    %c12_122 = arith.constant 12 : index
    %c0_123 = arith.constant 0 : index
    %81 = vector.load %arg1[%c0_121, %c12_122, %c0_123] : memref<1x16x128xbf16, #tpu.memory_space<vmem>>, vector<1x4x81xbf16>
    %82 = vector.shape_cast %81 : vector<1x4x81xbf16> to vector<4x81xbf16>
    %c0_124 = arith.constant 0 : index
    %c243 = arith.constant 243 : index
    %83 = vector.load %arg5[%c0_124, %c243] : memref<36x324xbf16, #tpu.memory_space<vmem>>, vector<4x81xbf16>
    tpu.vector_store %arg5[%c0_124, %c243], %82 {strides = array<i32>} : memref<36x324xbf16, #tpu.memory_space<vmem>>, vector<4x81xbf16>,
    %c0_125 = arith.constant 0 : index
    %c8_126 = arith.constant 8 : index
    %c1_127 = arith.constant 1 : index
    %84 = vector.load %arg1[%c0_125, %c8_126, %c1_127] : memref<1x16x128xbf16, #tpu.memory_space<vmem>>, vector<1x4x81xbf16>
    %85 = vector.shape_cast %84 : vector<1x4x81xbf16> to vector<4x81xbf16>
    %c4_128 = arith.constant 4 : index
    %c243_129 = arith.constant 243 : index
    %86 = vector.load %arg5[%c4_128, %c243_129] : memref<36x324xbf16, #tpu.memory_space<vmem>>, vector<4x81xbf16>
    tpu.vector_store %arg5[%c4_128, %c243_129], %85 {strides = array<i32>} : memref<36x324xbf16, #tpu.memory_space<vmem>>, vector<4x81xbf16>,
    %c0_130 = arith.constant 0 : index
    %c12_131 = arith.constant 12 : index
    %c1_132 = arith.constant 1 : index
    %87 = vector.load %arg1[%c0_130, %c12_131, %c1_132] : memref<1x16x128xbf16, #tpu.memory_space<vmem>>, vector<1x4x81xbf16>
    %88 = vector.shape_cast %87 : vector<1x4x81xbf16> to vector<4x81xbf16>
    %c8_133 = arith.constant 8 : index
    %c243_134 = arith.constant 243 : index
    %89 = vector.load %arg5[%c8_133, %c243_134] : memref<36x324xbf16, #tpu.memory_space<vmem>>, vector<4x81xbf16>
    tpu.vector_store %arg5[%c8_133, %c243_134], %88 {strides = array<i32>} : memref<36x324xbf16, #tpu.memory_space<vmem>>, vector<4x81xbf16>,
    %c0_135 = arith.constant 0 : index
    %c4_136 = arith.constant 4 : index
    %c9_137 = arith.constant 9 : index
    %90 = vector.load %arg1[%c0_135, %c4_136, %c9_137] : memref<1x16x128xbf16, #tpu.memory_space<vmem>>, vector<1x4x81xbf16>
    %91 = vector.shape_cast %90 : vector<1x4x81xbf16> to vector<4x81xbf16>
    %c12_138 = arith.constant 12 : index
    %c243_139 = arith.constant 243 : index
    %92 = vector.load %arg5[%c12_138, %c243_139] : memref<36x324xbf16, #tpu.memory_space<vmem>>, vector<4x81xbf16>
    tpu.vector_store %arg5[%c12_138, %c243_139], %91 {strides = array<i32>} : memref<36x324xbf16, #tpu.memory_space<vmem>>, vector<4x81xbf16>,
    %c0_140 = arith.constant 0 : index
    %c0_141 = arith.constant 0 : index
    %c10_142 = arith.constant 10 : index
    %93 = vector.load %arg1[%c0_140, %c0_141, %c10_142] : memref<1x16x128xbf16, #tpu.memory_space<vmem>>, vector<1x4x81xbf16>
    %94 = vector.shape_cast %93 : vector<1x4x81xbf16> to vector<4x81xbf16>
    %c16_143 = arith.constant 16 : index
    %c243_144 = arith.constant 243 : index
    %95 = vector.load %arg5[%c16_143, %c243_144] : memref<36x324xbf16, #tpu.memory_space<vmem>>, vector<4x81xbf16>
    tpu.vector_store %arg5[%c16_143, %c243_144], %94 {strides = array<i32>} : memref<36x324xbf16, #tpu.memory_space<vmem>>, vector<4x81xbf16>,
    %c0_145 = arith.constant 0 : index
    %c4_146 = arith.constant 4 : index
    %c10_147 = arith.constant 10 : index
    %96 = vector.load %arg1[%c0_145, %c4_146, %c10_147] : memref<1x16x128xbf16, #tpu.memory_space<vmem>>, vector<1x4x81xbf16>
    %97 = vector.shape_cast %96 : vector<1x4x81xbf16> to vector<4x81xbf16>
    %c20_148 = arith.constant 20 : index
    %c243_149 = arith.constant 243 : index
    %98 = vector.load %arg5[%c20_148, %c243_149] : memref<36x324xbf16, #tpu.memory_space<vmem>>, vector<4x81xbf16>
    tpu.vector_store %arg5[%c20_148, %c243_149], %97 {strides = array<i32>} : memref<36x324xbf16, #tpu.memory_space<vmem>>, vector<4x81xbf16>,
    %c0_150 = arith.constant 0 : index
    %c12_151 = arith.constant 12 : index
    %c9_152 = arith.constant 9 : index
    %99 = vector.load %arg1[%c0_150, %c12_151, %c9_152] : memref<1x16x128xbf16, #tpu.memory_space<vmem>>, vector<1x4x81xbf16>
    %100 = vector.shape_cast %99 : vector<1x4x81xbf16> to vector<4x81xbf16>
    %c24_153 = arith.constant 24 : index
    %c243_154 = arith.constant 243 : index
    %101 = vector.load %arg5[%c24_153, %c243_154] : memref<36x324xbf16, #tpu.memory_space<vmem>>, vector<4x81xbf16>
    tpu.vector_store %arg5[%c24_153, %c243_154], %100 {strides = array<i32>} : memref<36x324xbf16, #tpu.memory_space<vmem>>, vector<4x81xbf16>,
    %c0_155 = arith.constant 0 : index
    %c8_156 = arith.constant 8 : index
    %c10_157 = arith.constant 10 : index
    %102 = vector.load %arg1[%c0_155, %c8_156, %c10_157] : memref<1x16x128xbf16, #tpu.memory_space<vmem>>, vector<1x4x81xbf16>
    %103 = vector.shape_cast %102 : vector<1x4x81xbf16> to vector<4x81xbf16>
    %c28_158 = arith.constant 28 : index
    %c243_159 = arith.constant 243 : index
    %104 = vector.load %arg5[%c28_158, %c243_159] : memref<36x324xbf16, #tpu.memory_space<vmem>>, vector<4x81xbf16>
    tpu.vector_store %arg5[%c28_158, %c243_159], %103 {strides = array<i32>} : memref<36x324xbf16, #tpu.memory_space<vmem>>, vector<4x81xbf16>,
    %c0_160 = arith.constant 0 : index
    %c12_161 = arith.constant 12 : index
    %c10_162 = arith.constant 10 : index
    %105 = vector.load %arg1[%c0_160, %c12_161, %c10_162] : memref<1x16x128xbf16, #tpu.memory_space<vmem>>, vector<1x4x81xbf16>
    %106 = vector.shape_cast %105 : vector<1x4x81xbf16> to vector<4x81xbf16>
    %c32_163 = arith.constant 32 : index
    %c243_164 = arith.constant 243 : index
    %107 = vector.load %arg5[%c32_163, %c243_164] : memref<36x324xbf16, #tpu.memory_space<vmem>>, vector<4x81xbf16>
    tpu.vector_store %arg5[%c32_163, %c243_164], %106 {strides = array<i32>} : memref<36x324xbf16, #tpu.memory_space<vmem>>, vector<4x81xbf16>,
    %c0_165 = arith.constant 0 : index
    %c0_166 = arith.constant 0 : index
    %108 = vector.load %arg2[%c0_165, %c0_166] : memref<8x36xbf16, #tpu.memory_space<vmem>>, vector<8x36xbf16>
    %c0_167 = arith.constant 0 : index
    %c0_168 = arith.constant 0 : index
    %109 = vector.load %arg5[%c0_167, %c0_168] : memref<36x324xbf16, #tpu.memory_space<vmem>>, vector<36x324xbf16>
    %cst = arith.constant dense<0.000000e+00> : vector<8x324xf32>
    %110 = tpu.matmul %108, %109, %cst {dimension_numbers = #tpu.dot_dimension_numbers<[1], [0], [0], [1], [0, 0, 1, 1], [], []>} : vector<8x36xbf16>, vector<36x324xbf16>, vector<8x324xf32> -> vector<8x324xf32>
    %c0_169 = arith.constant 0 : index
    %c0_170 = arith.constant 0 : index
    %111 = vector.load %arg3[%c0_169, %c0_170] : memref<8x3xf32, #tpu.memory_space<vmem>>, vector<8x1xf32>
    %c0_171 = arith.constant 0 : index
    %c1_172 = arith.constant 1 : index
    %112 = vector.load %arg3[%c0_171, %c1_172] : memref<8x3xf32, #tpu.memory_space<vmem>>, vector<8x1xf32>
    %c0_173 = arith.constant 0 : index
    %c2 = arith.constant 2 : index
    %113 = vector.load %arg3[%c0_173, %c2] : memref<8x3xf32, #tpu.memory_space<vmem>>, vector<8x1xf32>
    %114 = vector.broadcast %111 : vector<8x1xf32> to vector<8x324xf32>
    %115 = arith.addf %110, %114 : vector<8x324xf32>
    %cst_174 = arith.constant 0.000000e+00 : f32
    %116 = vector.broadcast %cst_174 : f32 to vector<8x324xf32>
    %117 = arith.maximumf %115, %116 : vector<8x324xf32>
    %118 = vector.broadcast %112 : vector<8x1xf32> to vector<8x324xf32>
    %119 = arith.mulf %117, %118 : vector<8x324xf32>
    %120 = vector.broadcast %113 : vector<8x1xf32> to vector<8x324xf32>
    %121 = arith.addf %119, %120 : vector<8x324xf32>
    %122 = vector.extract_strided_slice %121 {offsets = [0, 0], sizes = [8, 81], strides = [1, 1]} : vector<8x324xf32> to vector<8x81xf32>
    %123 = vector.extract_strided_slice %121 {offsets = [0, 81], sizes = [8, 81], strides = [1, 1]} : vector<8x324xf32> to vector<8x81xf32>
    %124 = arith.maximumf %122, %123 : vector<8x81xf32>
    %125 = vector.extract_strided_slice %121 {offsets = [0, 162], sizes = [8, 81], strides = [1, 1]} : vector<8x324xf32> to vector<8x81xf32>
    %126 = vector.extract_strided_slice %121 {offsets = [0, 243], sizes = [8, 81], strides = [1, 1]} : vector<8x324xf32> to vector<8x81xf32>
    %127 = arith.maximumf %125, %126 : vector<8x81xf32>
    %128 = arith.maximumf %124, %127 : vector<8x81xf32>
    %c0_175 = arith.constant 0 : index
    %c0_176 = arith.constant 0 : index
    %c0_177 = arith.constant 0 : index
    %129 = vector.load %arg4[%c0_175, %c0_176, %c0_177] : memref<1x8x81xf32, #tpu.memory_space<vmem>>, vector<1x8x81xf32>
    %130 = vector.shape_cast %129 : vector<1x8x81xf32> to vector<8x81xf32>
    %131 = vector.shape_cast %128 : vector<8x81xf32> to vector<1x8x81xf32>
    tpu.vector_store %arg4[%c0_175, %c0_176, %c0_177], %131 {strides = array<i32>} : memref<1x8x81xf32, #tpu.memory_space<vmem>>, vector<1x8x81xf32>,
    return
  }
  func.func @transform_0(%arg0: i32) -> (i32, i32, i32) {
    %c0_i32 = arith.constant 0 : i32
    %c0_i32_0 = arith.constant 0 : i32
    %c0_i32_1 = arith.constant 0 : i32
    return %arg0, %c0_i32, %c0_i32_0 : i32, i32, i32
  }
  func.func @transform_1(%arg0: i32) -> (i32, i32) {
    %c0_i32 = arith.constant 0 : i32
    %c0_i32_0 = arith.constant 0 : i32
    %c0_i32_1 = arith.constant 0 : i32
    return %c0_i32, %c0_i32_0 : i32, i32
  }
  func.func @transform_2(%arg0: i32) -> (i32, i32) {
    %c0_i32 = arith.constant 0 : i32
    %c0_i32_0 = arith.constant 0 : i32
    %c0_i32_1 = arith.constant 0 : i32
    return %c0_i32, %c0_i32_0 : i32, i32
  }
  func.func @transform_3(%arg0: i32) -> (i32, i32, i32) {
    %c0_i32 = arith.constant 0 : i32
    %c0_i32_0 = arith.constant 0 : i32
    %c0_i32_1 = arith.constant 0 : i32
    return %arg0, %c0_i32, %c0_i32_0 : i32, i32, i32
  }
}

</mosaic_0001>

<bundles_post_ra>
// kernel: tpu_custom_call.1
= control target key start
LH: loop header
LB: loop body
LE: loop exit
PB: predicated region body
PF: predicated region fallthrough
CT: control target
= control target key end

     0   :  { %8 = vsyncpa [#allocation4], 0  ;;  %s1284_s0 = inlined_call_operand.hbm [shape: bf16[2,16,128], index: 0, kind: input, shape index: {}]   ;;  %s1285_s1 = inlined_call_operand.vmem [shape: bf16[8,36], index: 1, kind: input, shape index: {}]   ;;  %s1286_s2 = inlined_call_operand.vmem [shape: f32[8,3], index: 2, kind: input, shape index: {}]   ;;  %s1287_s3 = inlined_call_operand.hbm [shape: f32[2,8,81], index: 3, kind: output, shape index: {}]  }
   0x1   :  { %10 = vsyncpa [#allocation4 + $0x1], 0 }
   0x2   :  { %11 = vsyncpa [#allocation5], 0 }
   0x3   :  { %13 = vsyncpa [#allocation5 + $0x1], 0  ;;  %s989_s12 = smov 0   ;;  %s991_s13 = smov 0  }
   0x4   :  { %s993_s14 = smov 0   ;;  %s995_s15 = smov 0  }
   0x5 LB: > { %s1010_s16 = sadd.s32 4294967295, %s945_s15   ;;  %s720_s17 = sadd.s32 4294967294, %s945_s15   ;;  %s945_s15 = sphi %s995_s15, %s1305_s15   ;;  %s941_s14 = sphi %s993_s14, %s1304_s14   ;;  %s937_s13 = sphi %s991_s13, %s1303_s13   ;;  %s933_s12 = sphi %s989_s12, %s1302_s12  }
   0x6   : > { %s1014_s18 = sadd.s32 1, %s945_s15   ;;  %s26_s19 = sadd.s32 1, %s941_s14 }
   0x7   : > { %s23_s20 = ssub.s32 %s945_s15, %s1014_s18  ;;  %p33_p0 = scmp.ne.s32.totalorder %s941_s14, %s937_s13 }
   0x8   : > { %p24_p1 = scmp.eq.s32.totalorder %s23_s20, 0  ;;  %p34_p2 = scmp.eq.s32.totalorder %s945_s15, 0 }
   0x9   : > { %p39_p3 = scmp.ne.s32.totalorder %s937_s13, %s933_s12  ;;  %p40_p4 = scmp.eq.s32.totalorder %s1010_s16, 0 }
   0xa   : > { %s1026_s21 = scalar_select %p24_p1, %s941_s14, %s26_s19  }
   0xb   : > { %p1028_p5 = por %p34_p2, %p33_p0  ;;  %p1032_p6 = por %p40_p4, %p39_p3 }
   0xc   : > { %p105_p7 = scmp.eq.s32.totalorder %s1010_s16, 1  ;;  %p111_p8 = scmp.eq.s32.totalorder %s720_s17, 1 }
   0xd   : > { %p789_p10 = scmp.lt.s32.totalorder %s945_s15, 2  ;;  %s137_s26 = sand.u32 1, %s941_s14  }
   0xe   : > { %p1039_p11 = por %p105_p7, %p33_p0  ;;  %p1043_p12 = por %p111_p8, %p39_p3 }
   0xf   : > { %s770_s27 = sshll.u32 %s945_s15, 3  ;;  %s723_s28 = sshll.u32 %s137_s26, 3 }
  0x10   : > { %s146_s4 = scalar_lea.hbm %s1284_s0, %s770_s27  ;;  %s141_s6 = scalar_lea.vmem [#allocation3], %s723_s28 }
  0x11   : > { %s147_s5 = sshll.u32 %s146_s4, 4  ;;  %s149_s7 = sshll.u32 %s141_s6, 4  ;;  %s148_s5 = int_to_ptr.hbm [resolvable:$true] %s147_s5  ;;  %s150_s7 = int_to_ptr.vmem [resolvable:$true] %s149_s7 }
  0x12   : > { %p1054_p13 = pnand %p789_p10, %p1028_p5  ;;  %p726_p0 = scmp.ge.s32.totalorder %s945_s15, 1 }
  0x13   : > { %p157_p1 = scmp.lt.s32.totalorder %s945_s15, 3  ;;  %s138_s9 = scalar_lea.sflag [#allocation4], %s137_s26 }
  0x14   : > { %s849_s10 = sshra.s32 %s148_s5, 4  ;;  %p853_p3 = pneg %p1054_p13  ;;  %s850_s10 = int_to_ptr.hbm [resolvable:$true] %s849_s10 }
  0x15   : > { %s851_s11 = scalar_lea.hbm %s850_s10, 8  ;;  %s856_s20 = scalar_lea.hbm %s1284_s0, 16 }
  0x16   : > { %p852_p2 = scmp.ne.s32.totalorder %s850_s10, %s851_s11  ;;  %p857_p5 = scmp.lt.s32.totalorder %s850_s10, %s1284_s0 }
  0x17   : > { %p858_p8 = scmp.lt.s32.totalorder %s856_s20, %s851_s11 }
  0x18   : > { %p854_p4 = pnand %p853_p3, %p852_p2 }
  0x19   : > { %p859_p10 = por %p858_p8, %p857_p5 }
  0x1a   : > { %p855_p7 = pneg %p854_p4 }
  0x1c   : > { %p860_p9 = pnand %p859_p10, %p855_p7 }
  0x1e   : > { %863 = shalt.err (!%p860_p9)
}
  0x1f   : > { %s947_s26 = smov 64   ;;  %s948_s28 = smov 4  }
  0x20   : > { %784 = dma.hbm_to_vmem [thread:$0]  (!%p1054_p13), %s148_s5, 128, %s150_s7, %s138_s9, %s947_s26, %s947_s26, %s948_s28  }
  0x21   : > { %p158_p2 = pnand %p726_p0, %p157_p1 }
  0x22   : > { %s1075_s29 = sand.u32 (!%p158_p2), 1, %s937_s13  }
  0x23   : > { %161 = sbr.rel (%p158_p2) target bundleno = 631 (0x277), region = 32  ;;  %s727_s30 = sshll.u32 (!%p158_p2), %s1075_s29, 3 }
  0x24   : > { %s164_s4 = scalar_lea.sflag (!%p158_p2), [#allocation4], %s1075_s29  ;;  %s1081_s6 = scalar_lea.vmem (!%p158_p2), [#allocation3], %s727_s30 }
  0x28   : > { %924 = dma.done.wait (%p1032_p6), %s164_s4, 128  }
  0x29   : > { %926 = vsyncadd (%p1032_p6), %s164_s4, 4294967168  ;;  %v386_v0 = vld [vmem:[%s1081_s6 + $0x4] sm:$0x3]  ;;  %v234_v1 = vld [vmem:[%s1081_s6] sm:$0x3]  ;;  %s949_s5 = smov 24  }
  0x2a   : > { %388 = vrot.lane.b32.xlu1 %v386_v0, %s949_s5  ;;  %s950_s7 = smov 118   ;;  %v285_v2 = vld [vmem:[%s1081_s6 + $0x4] sm:$0x3]  ;;  %v474_v3 = vld [vmem:[%s1081_s6 + $0x4] sm:$0xc]  ;;  %s951_s23 = smov 80  }
  0x2b   : > { %236 = vrot.lane.b32.xlu0 %v234_v1, %s950_s7  ;;  %v322_v4 = vld [vmem:[%s1081_s6] sm:$0xc]  ;;  %287 = vrot.lane.b32.xlu2 %v285_v2, %s951_s23  ;;  %v738_v5 = vrot.slane %v474_v3, 10  ;;  %v293_v7 = vld [vmem:[%s1081_s6 + $0x4] sm:$0xc]  ;;  %s952_s8 = smov 105  }
  0x2c   : > { %v733_v6 = vrot.slane %v322_v4, 10  ;;  %s953_s9 = smov 71   ;;  %v312_v8 = vld [vmem:[%s1081_s6] sm:$0x3]  ;;  %v301_v9 = vld [vmem:[%s1081_s6] sm:$0xc] }
  0x2d   : > { %v215_v10 = vld [vmem:[%s1081_s6 + $0x4] sm:$0x3]  ;;  %v314_v11 = vrot.slane %v312_v8, 6  ;;  %v732_v12 = vrot.slane %v301_v9, 10  ;;  %s954_s10 = smov 72   ;;  %s955_s11 = smov 127  }
  0x2e   : > { %v217_v13 = vrot.slane %v215_v10, 6  ;;  %v228_v14 = vld [vmem:[%s1081_s6] sm:$0xc]  ;;  %v222_v15 = vld [vmem:[%s1081_s6] sm:$0x3]  ;;  %s956_s17 = smov 119  }
  0x2f   : > { %v438_v16 = vld [vmem:[%s1081_s6] sm:$0x3]  ;;  %v455_v17 = vld [vmem:[%s1081_s6 + $0x4] sm:$0xc]  ;;  %v465_v18 = vld [vmem:[%s1081_s6 + $0x4] sm:$0x3] }
  0x30   : > { %v737_v19 = vrot.slane %v455_v17, 10  ;;  %v447_v20 = vld [vmem:[%s1081_s6] sm:$0xc]  ;;  %v467_v21 = vrot.slane %v465_v18, 6  ;;  %s957_s19 = smov 106   ;;  %s958_s20 = smov 81  }
  0x31   : > { %v254_v22 = vld [vmem:[%s1081_s6] sm:$0x3]  ;;  %v240_v23 = vld [vmem:[%s1081_s6] sm:$0xc]  ;;  %v277_v31 = vld [vmem:[%s1081_s6 + $0x4] sm:$0xc] }
  0x32   : > { %478 = vrot.lane.b32.xlu1 %v738_v5, %s952_s8  ;;  %v267_v24 = vld [vmem:[%s1081_s6] sm:$0xc]  ;;  %v256_v25 = vrot.slane %v254_v22, 6  ;;  %v730_v26 = vrot.slane %v240_v23, 10  ;;  %v367_v29 = vld [vmem:[%s1081_s6] sm:$0x3] }
  0x33   : > { %326 = vrot.lane.b32.xlu0 %v733_v6, %s953_s9  ;;  %295 = vrot.lane.b32.xlu2 %v293_v7, %s951_s23  ;;  %v731_v27 = vrot.slane %v267_v24, 10  ;;  %v359_v28 = vld [vmem:[%s1081_s6] sm:$0xc]  ;;  %v369_v32 = vrot.slane %v367_v29, 6  ;;  %s959_s22 = smov 25   ;;  %vm193_vm0 = vcmask 656384  }
  0x34   : > { %v734_v30 = vrot.slane %v359_v28, 10  ;;  %v380_v33 = vld [vmem:[%s1081_s6 + $0x4] sm:$0xc]  ;;  %v374_v34 = vld [vmem:[%s1081_s6 + $0x4] sm:$0x3]  ;;  %s960_s27 = smov 114  }
  0x35   : > { %v198_v35 = vld [vmem:[%s1081_s6] sm:$0x3]  ;;  %v406_v36 = vld [vmem:[%s1081_s6 + $0x4] sm:$0x3]  ;;  %v392_v37 = vld [vmem:[%s1081_s6 + $0x4] sm:$0xc] }
  0x36   : > { %v419_v38 = vld [vmem:[%s1081_s6 + $0x4] sm:$0xc]  ;;  %v408_v40 = vrot.slane %v406_v36, 6  ;;  %v735_v41 = vrot.slane %v392_v37, 10  ;;  %s961_s26 = smov 115   ;;  %s962_s28 = smov 34  }
  0x37   : > { %v209_v39 = vld [vmem:[%s1081_s6 + $0x4] sm:$0xc]  ;;  %v736_v43 = vrot.slane %v419_v38, 10  ;;  %v332_v44 = vld [vmem:[%s1081_s6 + $0x4] sm:$0x3]  ;;  %s963_s4 = smov 33  }
  0x38   : > { %v729_v42 = vrot.slane %v209_v39, 10  ;;  %v429_v45 = vld [vmem:[%s1081_s6] sm:$0xc]  ;;  %v339_v46 = vld [vmem:[%s1081_s6 + $0x4] sm:$0xc]  ;;  %vm250_vm1 = vcmask 1042056  }
  0x39   : > { %v352_v47 = vld [vmem:[%s1081_s6] sm:$0x3]  ;;  %v346_v49 = vld [vmem:[%s1081_s6 + $0x4] sm:$0x3]  ;;  %vm251_vm2 = vcmask 275460   ;;  %vm260_vm3 = vcmask 654336  }
  0x3a   : > { %315 = vrot.lane.b32.xlu1 %v314_v11, %s953_s9  ;;  %214 = vst.msk [vmem:[#allocation2 + $0x18] sm:$0x3] %vm193_vm0, %v729_v42  ;;  %v354_v48 = vrot.slane %v352_v47, 6  ;;  %vm1139_vm4 = vmor %vm251_vm2, %vm250_vm1  ;;  %vm263_vm5 = vcmask 1044106   ;;  %vm264_vm6 = vcmask 277510   ;;  %vm196_vm7 = vcmask 658434  }
  0x3b   : > { %305 = vrot.lane.b32.xlu0 %v732_v12, %s954_s10  ;;  %218 = vrot.lane.b32.xlu2 %v217_v13, %s955_s11  ;;  %vm1147_vm8 = vmor %vm264_vm6, %vm263_vm5  ;;  %vm318_vm9 = vcmask 580608   ;;  %vm402_vm10 = vcmask 1042328   ;;  %vm403_vm11 = vcmask 553988   ;;  %v195_v0 = vld [vmem:[%s1081_s6] sm:$0xc]  ;;  %vm443_vm12 = vcmask 859136  }
  0x3c   : > { %197 = vst.msk [vmem:[#allocation2] sm:$0xc] %vm196_vm7, %v195_v0  ;;  %vm337_vm13 = vcmask 935184   ;;  %vm1161_vm14 = vmor %vm403_vm11, %vm402_vm10  ;;  %v192_v6 = vld [vmem:[%s1081_s6] sm:$0x3]  ;;  %vm545_vm15 = vcmask 1041408  }
  0x3d   : > { %194 = vst.msk [vmem:[#allocation2] sm:$0x3] %vm193_vm0, %v192_v6  ;;  %v204_v11 = vld [vmem:[%s1081_s6 + $0x4] sm:$0x3]  ;;  %vm308_vm1 = vcmask 588800   ;;  %vm344_vm2 = vcmask 937234  }
  0x3e   : > { %v206_v12 = vrot.slane %v204_v11, 6  ;;  %vm415_vm5 = vcmask 1044378   ;;  %vm416_vm6 = vcmask 556038   ;;  %v495_v6 = vld [vmem:[%s1286_s2] sm:$0xff]  ;;  %vm617_vm10 = vcmask 384000   ;;  %s968_s9 = smov 94  }
  0x3f   : > { %s767_s10 = sshll.u32 %s1010_s16, 3 }
  0x40   : > { %208 = vst.msk [vmem:[#allocation2 + $0xc] sm:$0xc] %vm196_vm7, %v206_v12 }
  0x42   : > { %230 = vrot.lane.b32.xlu1 %v228_v14, %s956_s17 }
  0x43   : > { %224 = vrot.lane.b32.xlu0 %v222_v15, %s956_s17  ;;  %440 = vrot.lane.b32.xlu2 %v438_v16, %s952_s8 }
  0x4a   : > { %459 = vrot.lane.b32.xlu1 %v737_v19, %s957_s19 }
  0x4b   : > { %449 = vrot.lane.b32.xlu0 %v447_v20, %s952_s8  ;;  %468 = vrot.lane.b32.xlu2 %v467_v21, %s952_s8  ;;  %s967_s8 = smov 47  }
  0x52   : > { %257 = vrot.lane.b32.xlu1 %v256_v25, %s951_s23 }
  0x53   : > { %244 = vrot.lane.b32.xlu0 %v730_v26, %s958_s20  ;;  %271 = vrot.lane.b32.xlu2 %v731_v27, %s951_s23 }
  0x5a   : > { %363 = vrot.lane.b32.xlu1 %v734_v30, %s959_s22 }
  0x5b   : > { %279 = vrot.lane.b32.xlu0 %v277_v31, %s958_s20  ;;  %370 = vrot.lane.b32.xlu2 %v369_v32, %s949_s5  ;;  %s190_s20 = scalar_lea.vmem [#allocation6], %s727_s30  ;;  %s899_s30 = scalar_lea.hbm %s1287_s3, 16 }
  0x62   : > { %382 = vrot.lane.b32.xlu1 %v380_v33, %s959_s22 }
  0x63   : > { %376 = vrot.lane.b32.xlu0 %v374_v34, %s959_s22  ;;  %200 = vrot.lane.b32.xlu2 %v198_v35, %s955_s11 }
  0x6a   : > { %409 = vrot.lane.b32.xlu1 %v408_v40, %s960_s27 }
  0x6b   : > { %396 = vrot.lane.b32.xlu0 %v735_v41, %s961_s26  ;;  %423 = vrot.lane.b32.xlu2 %v736_v43, %s960_s27  ;;  %s635_s26 = scalar_lea.sflag [#allocation5], %s1075_s29 }
  0x72   : > { %334 = vrot.lane.b32.xlu1 %v332_v44, %s962_s28 }
  0x73   : > { %431 = vrot.lane.b32.xlu0 %v429_v45, %s957_s19  ;;  %341 = vrot.lane.b32.xlu2 %v339_v46, %s962_s28  ;;  %s645_s19 = scalar_lea.hbm %s1287_s3, %s767_s10 }
  0x74   : > { %s649_s27 = sshll.u32 %s645_s19, 4  ;;  %s650_s27 = int_to_ptr.hbm [resolvable:$true] %s649_s27 }
  0x75   : > { %s893_s28 = sshra.s32 %s650_s27, 4  ;;  %s894_s28 = int_to_ptr.hbm [resolvable:$true] %s893_s28 }
  0x76   : > { %s895_s16 = scalar_lea.hbm %s894_s28, 8  ;;  %p900_p0 = scmp.lt.s32.totalorder %s894_s28, %s1287_s3 }
  0x77   : > { %p896_p6 = scmp.ne.s32.totalorder %s894_s28, %s895_s16  ;;  %p901_p1 = scmp.lt.s32.totalorder %s899_s30, %s895_s16 }
  0x79   : > { %p897_p9 = pnand %p896_p6, %p1039_p11  ;;  %p902_p3 = por %p901_p1, %p900_p0 }
  0x7a   : > { %355 = vrot.lane.b32.xlu1 %v354_v48, %s959_s22  ;;  %s647_s22 = sshll.u32 %s190_s20, 4  ;;  %s648_s22 = int_to_ptr.vmem [resolvable:$true] %s647_s22 }
  0x7b   : > { %348 = vrot.lane.b32.xlu0 %v346_v49, %s963_s4  ;;  %p898_p13 = pneg %p897_p9 }
  0x7d   : > { %p903_p4 = pnand %p902_p3, %p898_p13 }
  0x85   : > { %v288_v50 = vpop.permute.xlu2 %287 }
  0x86   : > { %v289_v52 = vrot.slane %v288_v50, 4 }
  0x88   : > { %v290_v53 = vsel %vm260_vm3, %v289_v52, %v288_v50 }
  0x89   : > { %292 = vst.msk [vmem:[#allocation2 + $0x18] sm:$0x33] %vm1139_vm4, %v290_v53 }
  0x8d   : > { %v296_v54 = vpop.permute.xlu2 %295 }
  0x8e   : > { %v297_v55 = vrot.slane %v296_v54, 4 }
  0x90   : > { %v298_v56 = vsel %vm260_vm3, %v297_v55, %v296_v54 }
  0x95   : > { %v219_v58 = vpop.permute.xlu2 %218 }
  0x96   : > { %221 = vst.msk [vmem:[#allocation2 + $0x18] sm:$0xc] %vm196_vm7, %v219_v58 }
  0x97   : > { %300 = vst.msk [vmem:[#allocation2 + $0x18] sm:$0xcc] %vm1147_vm8, %v298_v56 }
  0x9c   : > { %v389_v59 = vpop.permute.xlu1 %388 }
  0x9d   : > { %v237_v60 = vpop.permute.xlu0 %236  ;;  %v1155_v61 = vpop.permute.xlu2 %440 }
  0x9e   : > { %239 = vst.msk [vmem:[#allocation2 + $0x30] sm:$0x3] %vm193_vm0, %v237_v60  ;;  %v753_v39 = vld [vmem:[#allocation2 + $0x18] sm:$0xf]  ;;  %v442_v49 = vrot.slane %v1155_v61, 4 }
  0xa0   : > { %v444_v53 = vsel %vm443_vm12, %v442_v49, %v1155_v61 }
  0xa4   : > { %v479_v62 = vpop.permute.xlu1 %478 }
  0xa5   : > { %v327_v63 = vpop.permute.xlu0 %326  ;;  %v480_v1 = vrot.slane %v479_v62, 4  ;;  %v1158_v3 = vpop.permute.xlu2 %468 }
  0xa6   : > { %v328_v2 = vrot.slane %v327_v63, 4  ;;  %v470_v51 = vrot.slane %v1158_v3, 4 }
  0xa7   : > { %v481_v7 = vsel %vm443_vm12, %v480_v1, %v479_v62 }
  0xa8   : > { %v329_v5 = vsel %vm318_vm9, %v328_v2, %v327_v63  ;;  %v471_v61 = vsel %vm443_vm12, %v470_v51, %v1158_v3  ;;  %v484_v3 = vld [vmem:[%s1285_s1] sm:$0xf] }
  0xa9   : > { %331 = vst.msk [vmem:[#allocation2 + $0x30] sm:$0x33] %vm1139_vm4, %v329_v5 }
  0xaa   : > { %391 = vst.msk [vmem:[#allocation2 + $0x34] sm:$0x3] %vm337_vm13, %v389_v59 }
  0xab   : > { %483 = vst.msk [vmem:[#allocation2 + $0x34] sm:$0x33] %vm1161_vm14, %v481_v7 }
  0xac   : > { %v316_v8 = vpop.permute.xlu1 %315 }
  0xad   : > { %v306_v9 = vpop.permute.xlu0 %305  ;;  %v272_v10 = vpop.permute.xlu2 %271  ;;  %v317_v13 = vrot.slane %v316_v8, 4 }
  0xae   : > { %v307_v19 = vrot.slane %v306_v9, 4  ;;  %v273_v31 = vrot.slane %v272_v10, 4 }
  0xaf   : > { %v319_v25 = vsel %vm318_vm9, %v317_v13, %v316_v8  ;;  %vm247_vm9 = vcmask 662528   ;;  %v964_v8 = vmov 1  }
  0xb0   : > { %v309_v30 = vsel %vm308_vm1, %v307_v19, %v306_v9  ;;  %v274_v32 = vsel %vm260_vm3, %v273_v31, %v272_v10  ;;  %846 = vset.pattern.permute.xlu0 %v964_v8  ;;  %v965_v9 = vmov 2  }
  0xb1   : > { %847 = vset.pattern.permute.xlu1 %v965_v9  ;;  %598 = vperm.xlu0 %846, %v495_v6  }
  0xb2   : > { %v493_v14 = vld [vmem:[#allocation2 + $0x30] sm:$0x33]  ;;  %v494_v15 = vld [vmem:[#allocation2 + $0x38] sm:$0x3]  ;;  %605 = vperm.xlu1 %847, %v495_v6  }
  0xb3   : > { %v523_v16 = vunpack.c.l.b16 %v493_v14  ;;  %v524_v17 = vunpack.c.h.b16 %v493_v14  ;;  %v525_v18 = vunpack.c.l.b16 %v494_v15 }
  0xb4   : > { %v231_v20 = vpop.permute.xlu1 %230 }
  0xb5   : > { %v225_v21 = vpop.permute.xlu0 %224  ;;  %v532_v22 = vpack.c.b16 %v523_v16, %v523_v16  ;;  %v533_v23 = vpack.c.b16 %v524_v17, %v524_v17  ;;  %v534_v24 = vpack.c.b16 %v525_v18, %v525_v18  ;;  %233 = vst.msk [vmem:[#allocation2 + $0x24] sm:$0xc] %vm196_vm7, %v231_v20  ;;  %v371_v26 = vpop.permute.xlu2 %370  ;;  %vm1185_vm7 = vmor %vm416_vm6, %vm415_vm5  ;;  %v966_v16 = vmov 0  }
  0xb6   : > { %321 = vst.msk [vmem:[#allocation2 + $0x24] sm:$0xcc] %vm1147_vm8, %v319_v25  ;;  %845 = vset.pattern.permute.xlu2 %v966_v16 }
  0xb7   : > { %v547_v27 = vsel %vm545_vm15, %v532_v22, 0  ;;  %v550_v28 = vsel %vm545_vm15, %v533_v23, 0  ;;  %v553_v29 = vsel %vm545_vm15, %v534_v24, 0  ;;  %227 = vst.msk [vmem:[#allocation2 + $0x24] sm:$0x3] %vm193_vm0, %v225_v21  ;;  %498 = vperm.xlu2 %845, %v495_v6  }
  0xb8   : > { %560 = vmatpush.bf16.msra.mxu0 %v547_v27  ;;  %573 = vmatpush.bf16.msra.mxu1 %v550_v28  ;;  %311 = vst.msk [vmem:[#allocation2 + $0x24] sm:$0x33] %vm1139_vm4, %v309_v30 }
  0xb9   : > { %586 = vmatpush.bf16.msra.mxu2 %v553_v29  ;;  %373 = vst.msk [vmem:[#allocation2 + $0x1c] sm:$0xc] %vm344_vm2, %v371_v26  ;;  %848 = vset.pattern.permute.xlu0 %v965_v9 }
  0xbc   : > { %v460_v33 = vpop.permute.xlu1 %459 }
  0xbd   : > { %v450_v34 = vpop.permute.xlu0 %449  ;;  %v201_v37 = vpop.permute.xlu2 %200  ;;  %v461_v58 = vrot.slane %v460_v33, 4 }
  0xbe   : > { %v451_v35 = vrot.slane %v450_v34, 4  ;;  %203 = vst.msk [vmem:[#allocation2 + $0xc] sm:$0x3] %vm193_vm0, %v201_v37  ;;  %vm434_vm0 = vcmask 867328  }
  0xbf   : > { %v775_v40 = vld [vmem:[#allocation2 + $0x20] sm:$0xf0]  ;;  %276 = vst.msk [vmem:[#allocation2 + $0xc] sm:$0x33] %vm1139_vm4, %v274_v32  ;;  %v462_v62 = vsel %vm434_vm0, %v461_v58, %v460_v33 }
  0xc0   : > { %v452_v38 = vsel %vm443_vm12, %v451_v35, %v450_v34  ;;  %v754_v41 = vor.u32 %v775_v40, %v753_v39 }
  0xc1   : > { %454 = vst.msk [vmem:[#allocation2 + $0x1c] sm:$0xcc] %vm1185_vm7, %v452_v38 }
  0xc2   : > { %561 = vmatpush.bf16.msra.mxu0 %v754_v41 }
  0xc4   : > { %v258_v42 = vpop.permute.xlu1 %257 }
  0xc5   : > { %v245_v43 = vpop.permute.xlu0 %244  ;;  %v259_v44 = vrot.slane %v258_v42, 4  ;;  %v1195_v46 = vpop.permute.xlu2 %423 }
  0xc6   : > { %v246_v45 = vrot.slane %v245_v43, 4  ;;  %v425_v22 = vrot.slane %v1195_v46, 4 }
  0xc7   : > { %v261_v47 = vsel %vm260_vm3, %v259_v44, %v258_v42  ;;  %vm412_vm3 = vcmask 932864  }
  0xc8   : > { %v248_v48 = vsel %vm247_vm9, %v246_v45, %v245_v43  ;;  %266 = vst.msk [vmem:[#allocation2] sm:$0xcc] %vm1147_vm8, %v261_v47  ;;  %v426_v26 = vsel %vm412_vm3, %v425_v22, %v1195_v46 }
  0xc9   : > { %253 = vst.msk [vmem:[#allocation2] sm:$0x33] %vm1139_vm4, %v248_v48  ;;  %vm541_vm4 = vcmask 293888  }
  0xcc   : > { %v364_v50 = vpop.permute.xlu1 %363 }
  0xcd   : > { %v280_v52 = vpop.permute.xlu0 %279  ;;  %366 = vst.msk [vmem:[#allocation2 + $0x1c] sm:$0x3] %vm337_vm13, %v364_v50  ;;  %v342_v55 = vpop.permute.xlu2 %341 }
  0xce   : > { %v281_v54 = vrot.slane %v280_v52, 4  ;;  %446 = vst.msk [vmem:[#allocation2 + $0x1c] sm:$0x33] %vm1161_vm14, %v444_v53 }
  0xcf   : > { %345 = vst.msk [vmem:[#allocation2 + $0x4] sm:$0xc] %vm344_vm2, %v342_v55 }
  0xd0   : > { %v282_v56 = vsel %vm247_vm9, %v281_v54, %v280_v52  ;;  %v741_v57 = vld [vmem:[#allocation2] sm:$0xf] }
  0xd1   : > { %284 = vst.msk [vmem:[#allocation2 + $0xc] sm:$0xcc] %vm1147_vm8, %v282_v56  ;;  %vm399_vm8 = vcmask 941056  }
  0xd4   : > { %v383_v59 = vpop.permute.xlu1 %382 }
  0xd5   : > { %v377_v60 = vpop.permute.xlu0 %376  ;;  %385 = vst.msk [vmem:[#allocation2 + $0x28] sm:$0xc] %vm344_vm2, %v383_v59  ;;  %v774_v7 = vld [vmem:[#allocation2 + $0x1c] sm:$0xf]  ;;  %v761_v12 = vld [vmem:[#allocation2 + $0x20] sm:$0xf] }
  0xd6   : > { %473 = vst.msk [vmem:[#allocation2 + $0x28] sm:$0xcc] %vm1185_vm7, %v471_v61 }
  0xd7   : > { %379 = vst.msk [vmem:[#allocation2 + $0x28] sm:$0x3] %vm337_vm13, %v377_v60 }
  0xd8   : > { %v772_v63 = vld [vmem:[#allocation2 + $0x8] sm:$0xf0]  ;;  %464 = vst.msk [vmem:[#allocation2 + $0x28] sm:$0x33] %vm1161_vm14, %v462_v62 }
  0xd9   : > { %v742_v0 = vor.u32 %v772_v63, %v741_v57 }
  0xdb   : > { %562 = vmatpush.bf16.msra.mxu0 %v742_v0 }
  0xdc   : > { %v410_v1 = vpop.permute.xlu1 %409 }
  0xdd   : > { %v397_v2 = vpop.permute.xlu0 %396  ;;  %v411_v5 = vrot.slane %v410_v1, 4 }
  0xde   : > { %763 = vmatmul.msk.bf16.vlgmr.msra.gmra.mxu0 %vm541_vm4, %v484_v3  ;;  %v398_v17 = vrot.slane %v397_v2, 4 }
  0xdf   : > { %v413_v10 = vsel %vm412_vm3, %v411_v5, %v410_v1  ;;  %v755_v11 = vld [vmem:[#allocation2 + $0x24] sm:$0xf0]  ;;  %v776_v13 = vld [vmem:[#allocation2 + $0x28] sm:$0xf0] }
  0xe0   : > { %418 = vst.msk [vmem:[#allocation2 + $0x4] sm:$0xcc] %vm1185_vm7, %v413_v10  ;;  %v758_v14 = vor.u32 %v774_v7, %v755_v11  ;;  %v762_v15 = vor.u32 %v776_v13, %v761_v12  ;;  %v400_v20 = vsel %vm399_vm8, %v398_v17, %v397_v2 }
  0xe2   : > { %574 = vmatpush.bf16.msra.mxu1 %v758_v14  ;;  %587 = vmatpush.bf16.msra.mxu2 %v762_v15 }
  0xe4   : > { %v335_v18 = vpop.permute.xlu1 %334 }
  0xe5   : > { %v432_v19 = vpop.permute.xlu0 %431  ;;  %338 = vst.msk [vmem:[#allocation2 + $0x4] sm:$0x3] %vm337_vm13, %v335_v18 }
  0xe6   : > { %405 = vst.msk [vmem:[#allocation2 + $0x4] sm:$0x33] %vm1161_vm14, %v400_v20  ;;  %v433_v21 = vrot.slane %v432_v19, 4 }
  0xe8   : > { %v435_v25 = vsel %vm434_vm0, %v433_v21, %v432_v19 }
  0xec   : > { %v356_v23 = vpop.permute.xlu1 %355 }
  0xed   : > { %v349_v24 = vpop.permute.xlu0 %348  ;;  %358 = vst.msk [vmem:[#allocation2 + $0x10] sm:$0xc] %vm344_vm2, %v356_v23  ;;  %v771_v27 = vld [vmem:[#allocation2 + $0x4] sm:$0xf]  ;;  %v749_v29 = vld [vmem:[#allocation2 + $0x8] sm:$0xf] }
  0xee   : > { %437 = vst.msk [vmem:[#allocation2 + $0x10] sm:$0xcc] %vm1185_vm7, %v435_v25 }
  0xef   : > { %351 = vst.msk [vmem:[#allocation2 + $0x10] sm:$0x3] %vm337_vm13, %v349_v24 }
  0xf0   : > { %428 = vst.msk [vmem:[#allocation2 + $0x10] sm:$0x33] %vm1161_vm14, %v426_v26 }
  0xf7   : > { %v743_v28 = vld [vmem:[#allocation2 + $0xc] sm:$0xf0]  ;;  %v773_v30 = vld [vmem:[#allocation2 + $0x10] sm:$0xf0] }
  0xf8   : > { %v746_v31 = vor.u32 %v771_v27, %v743_v28  ;;  %v750_v32 = vor.u32 %v773_v30, %v749_v29 }
  0xfa   : > { %575 = vmatpush.bf16.msra.mxu1 %v746_v31  ;;  %588 = vmatpush.bf16.msra.mxu2 %v750_v32 }
  0xfd   : > { %764 = vmatmul.msk.bf16.vlgmr.msra.gmra.mxu1 %vm541_vm4, %v484_v3  ;;  %765 = vmatmul.msk.bf16.vlgmr.msra.gmra.mxu2 %vm541_vm4, %v484_v3 }
 0x111   : > { %v499_v35 = vpop.permute.xlu2 %498 }
 0x123   : > { %v599_v38 = vpop.permute.xlu0 %598 }
 0x124   : > { %v606_v40 = vpop.permute.xlu1 %605 }
 0x15b   : > { %v564_v33 = vpop.f32.mrf.mxu0 }
 0x15c   : > { %v565_v39 = vadd.f32 %v564_v33, %v499_v35 }
 0x15e   : > { %v594_v44 = vmax.f32 %v565_v39, 0.0 }
 0x160   : > { %v601_v48 = vmul.f32 %v599_v38, %v594_v44 }
 0x162   : > { %v608_v53 = vadd.f32 %v606_v40, %v601_v48 }
 0x163   : > { %v566_v34 = vpop.f32.mrf.mxu0 }
 0x17a   : > { %v577_v36 = vpop.f32.mrf.mxu1 }
 0x17b   : > { %v578_v37 = vadd.f32 %v577_v36, %v499_v35 }
 0x17d   : > { %v595_v4 = vmax.f32 %v578_v37, 0.0 }
 0x17f   : > { %v602_v41 = vmul.f32 %v599_v38, %v595_v4 }
 0x180   : > { %v590_v42 = vpop.f32.mrf.mxu2 }
 0x181   : > { %v609_v43 = vadd.f32 %v606_v40, %v602_v41  ;;  %v591_v45 = vadd.f32 %v590_v42, %v499_v35 }
 0x182   : > { %v579_v46 = vpop.f32.mrf.mxu1 }
 0x183   : > { %v596_v47 = vmax.f32 %v591_v45, 0.0  ;;  %615 = vrot.lane.b32.xlu2 %v609_v43, %s967_s8 }
 0x185   : > { %v603_v49 = vmul.f32 %v599_v38, %v596_v47 }
 0x187   : > { %v610_v50 = vadd.f32 %v606_v40, %v603_v49 }
 0x188   : > { %v592_v52 = vpop.f32.mrf.mxu2 }
 0x189   : > { %622 = vrot.lane.b32.xlu1 %v610_v50, %s967_s8 }
 0x18b   : > { %613 = vrot.lane.b32.xlu2 %v608_v53, %s967_s8 }
 0x1dd   : > { %v616_v54 = vpop.permute.xlu2 %615 }
 0x1e5   : > { %v614_v55 = vpop.permute.xlu2 %613 }
 0x1e6   : > { %v618_v56 = vsel %vm617_vm10, %v614_v55, %v616_v54 }
 0x1e7   : > { %v620_v60 = vmax.f32 %v608_v53, %v618_v56 }
 0x1fb   : > { %v623_v51 = vpop.permute.xlu1 %622 }
 0x1fc   : > { %v624_v58 = vsel %vm617_vm10, %v616_v54, %v623_v51 }
 0x1fd   : > { %v626_v59 = vmax.f32 %v609_v43, %v624_v58 }
 0x1ff   : > { %628 = vrot.lane.b32.xlu0 %v626_v59, %s968_s9 }
 0x271   : > { %v629_v61 = vpop.permute.xlu0 %628 }
 0x272   : > { %v631_v62 = vmax.f32 %v620_v60, %v629_v61 }
 0x274   : > { %633 = vst.msk [vmem:[%s190_s20] sm:$0xff] %vm247_vm9, %v631_v62 }
 0x275   : > { %906 = shalt.err (!%p903_p4)
}
 0x276   : > { %779 = dma.vmem_to_hbm [thread:$0]  (%p1039_p11), %s648_s22, 128, %s650_s27, %s635_s26  }
 0x277 PF: > { %s661_s29 = sand.u32 1, %s933_s12   ;;  %p1301_p7 = scmp.ge.s32.totalorder %s945_s15, 2 }
 0x278   : > { %s662_s23 = scalar_lea.sflag [#allocation5], %s661_s29 }
 0x279   : > { %p786_p5 = pnand %p1301_p7, %p1043_p12 }
 0x27b   : > { %p787_p8 = pneg %p786_p5 }
 0x27d   : > { %928 = dma.done.wait (%p787_p8), %s662_s23, 128  }
 0x27e   : > { %930 = vsyncadd (%p787_p8), %s662_s23, 4294967168  ;;  %p16_p10 = scmp.ge.s32.totalorder %s1014_s18, 4   ;;  %s1302_s12 = smov %s937_s13 }
 0x27f   : > { %s1303_s13 = smov %s941_s14  ;;  %s1304_s14 = smov %s1026_s21 }
 0x280   : > { %s1305_s15 = smov %s1014_s18  ;;  %18 = sbr.rel (!%p16_p10) target bundleno = 5 (0x5), region = 77 }
 0x285   :  { %668 = vsyncpa [#allocation4], 1 }
 0x286   :  { %670 = vsyncpa [#allocation4 + $0x1], 1 }
 0x287   :  { %671 = vsyncpa [#allocation5], 1 }
 0x288   :  { %673 = vsyncpa [#allocation5 + $0x1], 1 }

</bundles_post_ra>
